<compile_context>
chip_gen: v7x
topology: tpu7x:2x2x1
jax: 0.10.0
libtpu: 0.0.40
codegen_flags: <defaults>
</compile_context>

<pallas_src>
import functools

import jax
import jax.numpy as jnp
from jax.experimental import pallas as pl
from jax.experimental.pallas import tpu as pltpu

_LANE = 128
_SUBLANE = 8


def _write_psum(psum_ref, loss_m, rows_last, mask_last):
    """Per-tile partial sum; only the ragged last tile pays the row mask."""
    if not mask_last:
        psum_ref[0, 0] = jnp.sum(loss_m)
        return

    last = pl.num_programs(0) - 1

    @pl.when(pl.program_id(0) != last)
    def _():
        psum_ref[0, 0] = jnp.sum(loss_m)

    @pl.when(pl.program_id(0) == last)
    def _():
        row = jax.lax.broadcasted_iota(jnp.int32, loss_m.shape, 0)
        psum_ref[0, 0] = jnp.sum(jnp.where(row < rows_last, loss_m, 0.0))


def _bce_kernel(logits_ref, targets_ref, loss_m_ref, psum_ref, *,
                rows_last, mask_last):
    x = logits_ref[...].astype(jnp.float32)
    t = targets_ref[...].astype(jnp.float32)
    # numerically-stable BCE with logits (== F.binary_cross_entropy_with_logits)
    loss_m = jnp.maximum(x, 0.0) - x * t + jnp.log1p(jnp.exp(-jnp.abs(x)))
    loss_m_ref[...] = loss_m.astype(loss_m_ref.dtype)
    _write_psum(psum_ref, loss_m, rows_last, mask_last)


def _bce_weighted_kernel(logits_ref, targets_ref, exp_r_ref, exp_1mr_ref,
                         loss_m_ref, psum_ref, *, rows_last, mask_last):
    x = logits_ref[...].astype(jnp.float32)
    t = targets_ref[...].astype(jnp.float32)
    bce = jnp.maximum(x, 0.0) - x * t + jnp.log1p(jnp.exp(-jnp.abs(x)))
    # ratio2weight with mask = (t > 0.5):
    #   weights = exp((1-mask)*ratio + mask*(1-ratio))
    #           = where(t > 0.5, exp(1-ratio), exp(ratio))
    # exp(...) precomputed on the (1, C) vectors in the wrapper.
    # `weights[mask > 1] = 0` in the original is dead code (mask is 0/1).
    weights = jnp.where(t > 0.5, exp_1mr_ref[...], exp_r_ref[...])
    loss_m = bce * weights
    loss_m_ref[...] = loss_m.astype(loss_m_ref.dtype)
    _write_psum(psum_ref, loss_m, rows_last, mask_last)


def bce_loss(logits, targets, sample_weight=None, size_sum=True, *,
             tile_rows=None):
    """Pallas implementation of BCELoss.forward. Returns ([loss], [loss_m])."""
    N, C = logits.shape
    out_dtype = logits.dtype  # loss_m in input dtype (halves writeback for bf16)

    itemsize_x = jnp.dtype(logits.dtype).itemsize
    itemsize_t = jnp.dtype(targets.dtype).itemsize
    itemsize_o = jnp.dtype(out_dtype).itemsize

    # ---- tiling -------------------------------------------------------------
    # Rows per tile chosen from the lane-padded VMEM footprint of the three
    # streamed arrays (logits, targets, loss_m), double-buffered. Budget
    # ~24 MiB of streaming buffers -> ~4 MiB/buffer at lane-dense C, which
    # leaves headroom under the 48 MiB scoped limit (v7x: 64 MiB VMEM per TC;
    # v5e/v6e: 128 MiB physical, default scoped limit is the binding constraint
    # so the explicit override below is load-bearing).
    c_lane = pl.cdiv(C, _LANE) * _LANE
    vmem_row_bytes = c_lane * (itemsize_x + itemsize_t + itemsize_o)
    stream_budget = 24 * 1024 * 1024
    if tile_rows is None:
        tile_rows = stream_budget // (2 * vmem_row_bytes)
    tile_rows = max(_SUBLANE, int(tile_rows))

    if tile_rows >= N:
        tile_n = N                                    # single block (full dim)
    else:
        tile_n = (tile_rows // _SUBLANE) * _SUBLANE   # multiple of 8, <= N
    grid_n = pl.cdiv(N, tile_n)
    rows_last = N - (grid_n - 1) * tile_n
    mask_last = rows_last != tile_n   # ragged last block -> mask its psum only

    # Blocks use the full C as last dim: no column pad copy, no column mask, no
    # output slice. (For C % 128 != 0 this means partial-lane stores; avoiding
    # them would require a relayout/pad copy of all three arrays, which costs
    # more HBM traffic than it saves on this HBM-bound kernel.)
    tile_spec = pl.BlockSpec((tile_n, C), lambda i: (i, 0))
    in_specs = [tile_spec, tile_spec]
    inputs = [logits, targets]
    kernel_kwargs = dict(rows_last=rows_last, mask_last=mask_last)

    if sample_weight is None:
        kernel = functools.partial(_bce_kernel, **kernel_kwargs)
    else:
        ratio = jnp.asarray(sample_weight, dtype=jnp.float32).reshape(1, C)
        exp_r = jnp.exp(ratio)          # weight when target <= 0.5
        exp_1mr = jnp.exp(1.0 - ratio)  # weight when target > 0.5
        inputs += [exp_r, exp_1mr]
        vec_spec = pl.BlockSpec((1, C), lambda i: (0, 0))
        in_specs += [vec_spec, vec_spec]
        kernel = functools.partial(_bce_weighted_kernel, **kernel_kwargs)

    out_shape = (
        jax.ShapeDtypeStruct((N, C), out_dtype),          # loss_m
        jax.ShapeDtypeStruct((grid_n, 1), jnp.float32),   # per-tile partial sums
    )
    out_specs = (
        pl.BlockSpec((tile_n, C), lambda i: (i, 0)),
        pl.BlockSpec((1, 1), lambda i: (i, 0),
                     memory_space=pltpu.MemorySpace.SMEM),
    )

    flops_per_elem = 9 if sample_weight is not None else 6
    cost = pl.CostEstimate(
        flops=flops_per_elem * N * C,
        transcendentals=2 * N * C,
        bytes_accessed=N * C * (itemsize_x + itemsize_t + itemsize_o),
    )

    loss_m, psums = pl.pallas_call(
        kernel,
        out_shape=out_shape,
        grid=(grid_n,),
        in_specs=in_specs,
        out_specs=out_specs,
        compiler_params=pltpu.CompilerParams(
            dimension_semantics=("parallel",),
            vmem_limit_bytes=48 * 1024 * 1024),
        cost_estimate=cost,
    )(*inputs)

    total = jnp.sum(psums)
    # size_sum=True:  loss_m.sum(1).mean() == total / N
    # size_sum=False: loss_m.sum()
    loss = total / N if size_sum else total
    return ([loss], [loss_m])


# TODO(synk): label-smoothing branch of the PyTorch module is dead
# (self.smoothing = None), so it is intentionally not implemented.


def _reference(logits, targets, sample_weight=None, size_sum=True):
    x = logits.astype(jnp.float32)
    t = targets.astype(jnp.float32)
    loss_m = jnp.maximum(x, 0.0) - x * t + jnp.log1p(jnp.exp(-jnp.abs(x)))
    if sample_weight is not None:
        ratio = jnp.asarray(sample_weight, jnp.float32)
        mask = jnp.where(t > 0.5, 1.0, 0.0)
        w = jnp.exp((1.0 - mask) * ratio + mask * (1.0 - ratio))
        loss_m = loss_m * w
    loss = loss_m.sum(1).mean() if size_sum else loss_m.sum()
    return loss, loss_m


if __name__ == "__main__":
    key = jax.random.PRNGKey(0)
    k1, k2, k3 = jax.random.split(key, 3)

    N, C = 8, 32  # batch x num_attributes
    logits = jax.random.normal(k1, (N, C), dtype=jnp.float32)
    targets = (jax.random.uniform(k2, (N, C)) > 0.5).astype(jnp.float32)
    sample_weight = jax.random.uniform(k3, (C,), minval=0.1, maxval=0.9)

    # Default config: sample_weight=None, size_sum=True
    (loss,), (loss_m,) = bce_loss(logits, targets)
    jax.block_until_ready(loss)
    jax.block_until_ready(loss_m)
    ref_loss, ref_loss_m = _reference(logits, targets)
    assert loss_m.shape == (N, C)
    assert jnp.allclose(loss, ref_loss, rtol=1e-5, atol=1e-4), (loss, ref_loss)
    assert jnp.allclose(loss_m, ref_loss_m, atol=1e-5)

    # Weighted config
    (loss_w,), (loss_m_w,) = bce_loss(logits, targets, sample_weight=sample_weight)
    jax.block_until_ready(loss_w)
    ref_loss_w, ref_loss_m_w = _reference(logits, targets, sample_weight=sample_weight)
    assert jnp.allclose(loss_w, ref_loss_w, rtol=1e-5, atol=1e-4)
    assert jnp.allclose(loss_m_w, ref_loss_m_w, atol=1e-5)

    # size_sum=False
    (loss_s,), _ = bce_loss(logits, targets, size_sum=False)
    jax.block_until_ready(loss_s)
    ref_loss_s, _ = _reference(logits, targets, size_sum=False)
    assert jnp.allclose(loss_s, ref_loss_s, rtol=1e-5, atol=1e-3)

    # Multi-tile ragged grid (forced small tile), weighted, lane-unaligned C
    N2, C2 = 40, 48
    l2 = jax.random.normal(k1, (N2, C2), dtype=jnp.float32)
    t2 = (jax.random.uniform(k2, (N2, C2)) > 0.5).astype(jnp.float32)
    sw2 = jax.random.uniform(k3, (C2,), minval=0.1, maxval=0.9)
    (loss2,), (loss_m2,) = bce_loss(l2, t2, sample_weight=sw2, tile_rows=16)
    jax.block_until_ready(loss2)
    ref_loss2, ref_loss_m2 = _reference(l2, t2, sample_weight=sw2)
    assert loss_m2.shape == (N2, C2)
    assert jnp.allclose(loss2, ref_loss2, rtol=1e-5, atol=1e-3)
    assert jnp.allclose(loss_m2, ref_loss_m2, atol=1e-5)

    print("KERNEL_OK")
</pallas_src>

<mosaic_0001>
module attributes {stable_mosaic.version = 11 : i64} {
  func.func @_bce_kernel(%arg0: i32, %arg1: memref<8x32xf32, #tpu.memory_space<vmem>>, %arg2: memref<8x32xf32, #tpu.memory_space<vmem>>, %arg3: memref<8x32xf32, #tpu.memory_space<vmem>>, %arg4: memref<1x1xf32, #tpu.memory_space<smem>>) attributes {dimension_semantics = [#tpu.dimension_semantics<parallel>], iteration_bounds = array<i64: 1>, scalar_prefetch = 0 : i64, scratch_operands = 0 : i64, tpu.core_type = #tpu.core_type<tc>, window_params = [{transform_indices = @transform_0, window_bounds = array<i64: 8, 32>}, {transform_indices = @transform_1, window_bounds = array<i64: 8, 32>}, {transform_indices = @transform_2, window_bounds = array<i64: 8, 32>}, {transform_indices = @transform_3, window_bounds = array<i64: 1, 1>}]} {
    %c0 = arith.constant 0 : index
    %c0_0 = arith.constant 0 : index
    %0 = vector.load %arg1[%c0, %c0_0] : memref<8x32xf32, #tpu.memory_space<vmem>>, vector<8x32xf32>
    %c0_1 = arith.constant 0 : index
    %c0_2 = arith.constant 0 : index
    %1 = vector.load %arg2[%c0_1, %c0_2] : memref<8x32xf32, #tpu.memory_space<vmem>>, vector<8x32xf32>
    %cst = arith.constant 0.000000e+00 : f32
    %2 = vector.broadcast %cst : f32 to vector<8x32xf32>
    %3 = arith.maximumf %0, %2 : vector<8x32xf32>
    %4 = arith.mulf %0, %1 : vector<8x32xf32>
    %5 = arith.subf %3, %4 : vector<8x32xf32>
    %6 = math.absf %0 : vector<8x32xf32>
    %cst_3 = arith.constant 0.000000e+00 : f32
    %7 = vector.broadcast %cst_3 : f32 to vector<8x32xf32>
    %8 = arith.subf %7, %6 : vector<8x32xf32>
    %9 = math.exp %8 : vector<8x32xf32>
    %10 = math.log1p %9 : vector<8x32xf32>
    %11 = arith.addf %5, %10 : vector<8x32xf32>
    %c0_4 = arith.constant 0 : index
    %c0_5 = arith.constant 0 : index
    %12 = vector.load %arg3[%c0_4, %c0_5] : memref<8x32xf32, #tpu.memory_space<vmem>>, vector<8x32xf32>
    tpu.vector_store %arg3[%c0_4, %c0_5], %11 {strides = array<i32>} : memref<8x32xf32, #tpu.memory_space<vmem>>, vector<8x32xf32>,
    %13 = vector.shape_cast %11 : vector<8x32xf32> to vector<1x8x32xf32>
    %cst_6 = arith.constant dense<0.000000e+00> : vector<1xf32>
    %14 = vector.multi_reduction <add>, %13, %cst_6 [1, 2] : vector<1x8x32xf32> to vector<1xf32>
    %15 = vector.shape_cast %14 : vector<1xf32> to vector<1x1x1xf32>
    %16 = vector.extract %15[0, 0, 0] : f32 from vector<1x1x1xf32>
    %c0_7 = arith.constant 0 : index
    %c0_8 = arith.constant 0 : index
    %17 = memref.load %arg4[%c0_7, %c0_8] : memref<1x1xf32, #tpu.memory_space<smem>>
    memref.store %16, %arg4[%c0_7, %c0_8] : memref<1x1xf32, #tpu.memory_space<smem>>
    return
  }
  func.func @transform_0(%arg0: i32) -> (i32, i32) {
    %c0_i32 = arith.constant 0 : i32
    %c0_i32_0 = arith.constant 0 : i32
    return %arg0, %c0_i32 : i32, i32
  }
  func.func @transform_1(%arg0: i32) -> (i32, i32) {
    %c0_i32 = arith.constant 0 : i32
    %c0_i32_0 = arith.constant 0 : i32
    return %arg0, %c0_i32 : i32, i32
  }
  func.func @transform_2(%arg0: i32) -> (i32, i32) {
    %c0_i32 = arith.constant 0 : i32
    %c0_i32_0 = arith.constant 0 : i32
    return %arg0, %c0_i32 : i32, i32
  }
  func.func @transform_3(%arg0: i32) -> (i32, i32) {
    %c0_i32 = arith.constant 0 : i32
    %c0_i32_0 = arith.constant 0 : i32
    return %arg0, %c0_i32 : i32, i32
  }
}

</mosaic_0001>

<bundles_post_ra>
// kernel: tpu_custom_call.1
= control target key start
LH: loop header
LB: loop body
LE: loop exit
PB: predicated region body
PF: predicated region fallthrough
CT: control target
= control target key end

     0   :  { %9 = vsyncpa [#allocation3], 0  ;;  %s267_s0 = inlined_call_operand.hbm [shape: f32[8,32], index: 0, kind: input, shape index: {}]   ;;  %s268_s1 = inlined_call_operand.hbm [shape: f32[8,32], index: 1, kind: input, shape index: {}]   ;;  %s269_s2 = inlined_call_operand.hbm [shape: f32[8,32], index: 2, kind: output, shape index: {0}]   ;;  %s270_s3 = inlined_call_operand.hbm [shape: f32[1,1], index: 3, kind: output, shape index: {1}]  }
   0x1   :  { %10 = vsyncpa [#allocation7], 0 }
   0x2   :  { %11 = vsyncpa [#allocation4], 0 }
   0x3   :  { %12 = vsyncpa [#allocation5], 0  ;;  %s195_s12 = smov [#allocation2]   ;;  %s196_s14 = smov [#allocation6]  }
   0x4   :  { %s19_s13 = sshll.u32 %s195_s12, 4  ;;  %s29_s15 = sshll.u32 %s196_s14, 4  ;;  %s20_s13 = int_to_ptr.vmem [resolvable:$true] %s19_s13  ;;  %s30_s15 = int_to_ptr.vmem [resolvable:$true] %s29_s15 }
   0x5   :  { %s111_s18 = scalar_lea.hbm %s267_s0, 128 }
   0x6   :  { %p112_p0 = scmp.ne.s32.totalorder %s267_s0, %s111_s18  ;;  %p115_p1 = scmp.lt.u32.totalorder %s111_s18, %s267_s0 }
   0x8   :  { %p117_p2 = pnand %p115_p1, %p112_p0 }
   0xa   :  { %120 = shalt.err (!%p117_p2)
}
   0xb   :  { %s121_s23 = scalar_lea.vmem %s20_s13, 128  ;;  %p126_p4 = scmp.lt.s32.totalorder %s20_s13, %s20_s13 }
   0xc   :  { %p122_p3 = scmp.ne.s32.totalorder %s20_s13, %s121_s23  ;;  %p127_p5 = scmp.lt.s32.totalorder %s121_s23, %s121_s23 }
   0xe   :  { %p128_p6 = por %p127_p5, %p126_p4 }
  0x10   :  { %p129_p7 = pnand %p128_p6, %p122_p3 }
  0x12   :  { %132 = shalt.err (!%p129_p7)
}
  0x13   :  { %22 = dma.hbm_to_vmem [thread:$0]  %s267_s0, 128, %s20_s13, [#allocation3]  }
  0x14   :  { %s133_s28 = scalar_lea.hbm %s268_s1, 128 }
  0x15   :  { %p134_p8 = scmp.ne.s32.totalorder %s268_s1, %s133_s28  ;;  %p137_p9 = scmp.lt.u32.totalorder %s133_s28, %s268_s1 }
  0x17   :  { %p139_p10 = pnand %p137_p9, %p134_p8 }
  0x19   :  { %142 = shalt.err (!%p139_p10)
}
  0x1a   :  { %s143_s6 = scalar_lea.vmem %s30_s15, 128  ;;  %p148_p12 = scmp.lt.s32.totalorder %s30_s15, %s30_s15 }
  0x1b   :  { %p144_p11 = scmp.ne.s32.totalorder %s30_s15, %s143_s6  ;;  %p149_p13 = scmp.lt.s32.totalorder %s143_s6, %s143_s6 }
  0x1d   :  { %p150_p0 = por %p149_p13, %p148_p12 }
  0x1f   :  { %p151_p1 = pnand %p150_p0, %p144_p11 }
  0x21   :  { %154 = shalt.err (!%p151_p1)
}
  0x22   :  { %32 = dma.hbm_to_vmem [thread:$0]  %s268_s1, 128, %s30_s15, [#allocation7]  }
  0x23   :  { %187 = dma.done.wait [#allocation3], 128  }
  0x24   :  { %188 = vsyncadd [#allocation3], 4294967168 }
  0x25   :  { %189 = dma.done.wait [#allocation7], 128  }
  0x26   :  { %190 = vsyncadd [#allocation7], 4294967168  ;;  %v39_v0 = vld [vmem:[#allocation2] sm:$0xff]  ;;  %v40_v7 = vld [vmem:[#allocation6] sm:$0xff]  ;;  %vm58_vm1 = vcmask 261120   ;;  %s197_s1 = smov [#allocation8]  }
  0x27   :  { %v44_v1 = vand.u32 2147483647, %v39_v0  ;;  %v41_v9 = vmax.f32 %v39_v0, 0.0  ;;  %v42_v10 = vmul.f32 %v40_v7, %v39_v0  ;;  %s78_s8 = sshll.u32 %s197_s1, 4  ;;  %s79_s8 = int_to_ptr.vmem [resolvable:$true] %s78_s8 }
  0x28   :  { %s155_s9 = scalar_lea.vmem %s79_s8, 128  ;;  %p160_p3 = scmp.lt.s32.totalorder %s79_s8, %s79_s8 }
  0x29   :  { %v45_v2 = vsub.f32 0.0, %v44_v1  ;;  %v43_v14 = vsub.f32 %v41_v9, %v42_v10  ;;  %p156_p2 = scmp.ne.s32.totalorder %s79_s8, %s155_s9  ;;  %p161_p4 = scmp.lt.s32.totalorder %s155_s9, %s155_s9 }
  0x2b   :  { %v46_v3 = vmul.f32 1.442695, %v45_v2  ;;  %p162_p5 = por %p161_p4, %p160_p3 }
  0x2d   :  { %107 = vpow2.f32 %v46_v3  ;;  %p163_p6 = pnand %p162_p5, %p156_p2 }
  0x37   :  { %v108_v4 = vpop.eup %107 }
  0x38   :  { %v48_v5 = vadd.f32 1.0, %v108_v4  ;;  %v51_v6 = vmul.f32 -0.5, %v108_v4  ;;  %v54_v11 = vand.u32 2147483647, %v108_v4 }
  0x3a   :  { %109 = vlog2.f32 %v48_v5  ;;  %v52_v8 = vadd.f32 1.0, %v51_v6  ;;  %vm55_vm0 = vcmp.lt.f32.partialorder %v54_v11, 0.0004427343 }
  0x3c   :  { %v53_v12 = vmul.f32 %v108_v4, %v52_v8 }
  0x44   :  { %v110_v13 = vpop.eup %109 }
  0x45   :  { %v50_v15 = vmul.f32 0.6931472, %v110_v13 }
  0x47   :  { %v56_v16 = vsel %vm55_vm0, %v53_v12, %v50_v15 }
  0x48   :  { %v57_v17 = vadd.f32 %v56_v16, %v43_v14 }
  0x4a   :  { %v60_v18 = vsel %vm58_vm1, %v57_v17, 0.0  ;;  %59 = vst.msk [vmem:[#allocation8] sm:$0xff] %vm58_vm1, %v57_v17 }
  0x4b   :  { %61 = vadd.xlane.f32.xlu0 %v60_v18 }
  0x4c   :  { %166 = shalt.err (!%p163_p6)
}
  0x4d   :  { %s167_s12 = scalar_lea.hbm %s269_s2, 128 }
  0x4e   :  { %p168_p7 = scmp.ne.s32.totalorder %s269_s2, %s167_s12  ;;  %p171_p8 = scmp.lt.u32.totalorder %s167_s12, %s269_s2 }
  0x50   :  { %p173_p9 = pnand %p171_p8, %p168_p7 }
  0x52   :  { %176 = shalt.err (!%p173_p9)
}
  0x53   :  { %81 = dma.vmem_to_hbm [thread:$0]  %s79_s8, 128, %s269_s2, [#allocation4]  }
  0x54   :  { %s177_s22 = scalar_lea.hbm %s270_s3, 16 }
  0x55   :  { %p178_p10 = scmp.ne.s32.totalorder %s270_s3, %s177_s22  ;;  %p181_p11 = scmp.lt.u32.totalorder %s177_s22, %s270_s3 }
  0x57   :  { %p183_p12 = pnand %p181_p11, %p178_p10 }
  0xd8   :  { %v62_v19 = vpop.xlane.xlu0 %61 }
  0xd9   :  { %v63_v20 = vrot.slane %v62_v19, 4 }
  0xdb   :  { %v64_v21 = vadd.f32 %v63_v20, %v62_v19 }
  0xdd   :  { %v65_v22 = vrot.slane %v64_v21, 2 }
  0xdf   :  { %v66_v23 = vadd.f32 %v65_v22, %v64_v21 }
  0xe1   :  { %v67_v24 = vrot.slane %v66_v23, 1 }
  0xe3   :  { %v68_v25 = vadd.f32 %v67_v24, %v66_v23 }
  0xe5   :  { %101 = vpush %v68_v25 }
 0x116   :  { %s102_s19 = spop %101 }
 0x117   :  { %71 = sst [smem:[#allocation9]] %s102_s19 }
 0x118   :  { %186 = shalt.err (!%p183_p12)
}
 0x119   :  { %s198_s26 = smov [#allocation9]  }
 0x11a   :  { %89 = dma.smem_to_hbm %s198_s26, 16, %s270_s3, [#allocation5]  }
 0x11b   :  { %191 = dma.done.wait [#allocation4], 128  }
 0x11c   :  { %192 = vsyncadd [#allocation4], 4294967168 }
 0x11d   :  { %193 = dma.done.wait [#allocation5], 16  }
 0x11e   :  { %194 = vsyncadd [#allocation5], 4294967280 }
 0x11f   :  { %96 = sfence }
 0x120   :  { %97 = vsyncpa [#allocation3], 1 }
 0x121   :  { %98 = vsyncpa [#allocation7], 1 }
 0x122   :  { %99 = vsyncpa [#allocation4], 1 }
 0x123   :  { %100 = vsyncpa [#allocation5], 1 }

</bundles_post_ra>
